<compile_context>
chip_gen: v5e
topology: v5e:2x2
jax: 0.10.0
libtpu: 0.0.40
codegen_flags: <defaults>
</compile_context>

<pallas_src>
import functools

import jax
import jax.numpy as jnp
from jax import lax
from jax.experimental import pallas as pl
from jax.experimental.pallas import tpu as pltpu


# ----------------------------------------------------------------------------
# Fused kernel: qkv projection + multi-head attention + output projection
# ----------------------------------------------------------------------------
def _fused_attention_kernel(scale, num_heads, head_dim, has_qkv_bias, *refs):
    # refs (has_qkv_bias=True):
    #   x_ref    : (1, N, C)  f32
    #   wqkv_ref : (C, 3C)    bf16
    #   bqkv_ref : (1, 3C)    f32
    #   wp_ref   : (C, 128)   bf16
    #   bp_ref   : (1, 128)   f32
    #   y_ref    : (1, N, 128)
    #   attn_ref : (1, H, N, N)
    #   s_scr    : (H, N, N)  f32 VMEM scratch (scores)
    #   ctx_scr  : (N, C)     f32 VMEM scratch (per-head contexts, head-concat)
    if has_qkv_bias:
        (x_ref, wqkv_ref, bqkv_ref, wp_ref, bp_ref,
         y_ref, attn_ref, s_scr, ctx_scr) = refs
    else:
        (x_ref, wqkv_ref, wp_ref, bp_ref,
         y_ref, attn_ref, s_scr, ctx_scr) = refs
        bqkv_ref = None

    H, Dh = num_heads, head_dim
    C = H * Dh

    xb = x_ref[0].astype(jnp.bfloat16)                              # (N, C)

    # --- one full-width qkv projection (bf16 MXU, f32 accumulation) ---------
    qkv = jnp.dot(xb, wqkv_ref[...], preferred_element_type=jnp.float32)  # (N, 3C)
    if bqkv_ref is not None:
        qkv = qkv + bqkv_ref[...]                                   # (1, 3C) broadcast

    # scale folded into q in f32 BEFORE the bf16 cast (precision)
    q = qkv[:, 0:C] * scale                                         # (N, C)
    k = qkv[:, C:2 * C]
    v = qkv[:, 2 * C:3 * C]
    qb = q.astype(jnp.bfloat16)
    kb = k.astype(jnp.bfloat16)
    vb = v.astype(jnp.bfloat16)

    # --- per-head scores into VMEM scratch (K=Dh matmuls are inherent) ------
    for h in range(H):                                              # static unroll (H small)
        qh = qb[:, h * Dh:(h + 1) * Dh]                             # (N, Dh)
        kh = kb[:, h * Dh:(h + 1) * Dh]                             # (N, Dh)
        # Q . K^T via last-axis contraction on both operands (no explicit .T)
        s_scr[h] = lax.dot_general(qh, kh, (((1,), (1,)), ((), ())),
                                   preferred_element_type=jnp.float32)  # (N, N)

    # --- softmax batched over ALL heads at once (one VPU/EUP/XLU pass) ------
    s = s_scr[...]                                                  # (H, N, N) f32
    s = s - jnp.max(s, axis=-1, keepdims=True)
    e = jnp.exp(s)
    p = e * pl.reciprocal(jnp.sum(e, axis=-1, keepdims=True), approx=True)

    attn_ref[0] = p.astype(attn_ref.dtype)                          # single store
    # attn_drop: identity in eval mode

    # --- per-head context, assembled head-major into (N, C) scratch ---------
    pb = p.astype(jnp.bfloat16)
    for h in range(H):
        ctx_scr[:, h * Dh:(h + 1) * Dh] = jnp.dot(
            pb[h], vb[:, h * Dh:(h + 1) * Dh],
            preferred_element_type=jnp.float32)                     # (N, Dh)

    # --- ONE full-depth output projection (K=C) + bias -----------------------
    y = jnp.dot(ctx_scr[...].astype(jnp.bfloat16), wp_ref[...],
                preferred_element_type=jnp.float32)                 # (N, 128)
    y_ref[0] = (y + bp_ref[...]).astype(y_ref.dtype)
    # proj_drop: identity in eval mode


# ----------------------------------------------------------------------------
# Module-equivalent forward
# ----------------------------------------------------------------------------
def init_attention_params(key, dim, num_heads=8, qkv_bias=False):
    k1, k2, k3 = jax.random.split(key, 3)
    params = {
        # stored as (in, out): x @ W
        "w_qkv": jax.random.normal(k1, (dim, dim * 3), jnp.float32) * 0.02,
        "w_proj": jax.random.normal(k2, (dim, 128), jnp.float32) * 0.02,
        "b_proj": jax.random.normal(k3, (128,), jnp.float32) * 0.02,
    }
    if qkv_bias:
        params["b_qkv"] = jnp.zeros((dim * 3,), jnp.float32)
    return params


def _vmem_limit_bytes():
    # Per-generation VMEM budget: v5e/v6e have 128 MiB physical (allow 64 MiB),
    # v7x only 64 MiB (stay <= 48 MiB). Falls back to a conservative 32 MiB.
    try:
        cap = pltpu.get_tpu_info().vmem_capacity_bytes
    except Exception:
        return 32 * 1024 * 1024
    if cap >= 100 * 1024 * 1024:
        return 64 * 1024 * 1024
    return 48 * 1024 * 1024


def attention_forward(params, x, num_heads=8, qk_scale=None, attn_dtype=jnp.float32):
    B, N, C = x.shape
    H = num_heads
    Dh = C // H
    scale = qk_scale if qk_scale is not None else Dh ** (-0.5)
    has_bias = "b_qkv" in params

    # Weights cast ONCE to bf16 (MXU-native); biases stay f32 (added post-acc).
    w_qkv = params["w_qkv"].astype(jnp.bfloat16)                    # (C, 3C)
    w_proj = params["w_proj"].astype(jnp.bfloat16)                  # (C, 128)
    b_proj = params["b_proj"].reshape(1, 128)

    kernel = functools.partial(_fused_attention_kernel, scale, H, Dh, has_bias)

    operands = [x, w_qkv]
    in_specs = [
        pl.BlockSpec((1, N, C), lambda b: (b, 0, 0)),               # x
        pl.BlockSpec((C, 3 * C), lambda b: (0, 0)),                 # w_qkv (bf16)
    ]
    if has_bias:
        operands.append(params["b_qkv"].reshape(1, 3 * C))
        in_specs.append(pl.BlockSpec((1, 3 * C), lambda b: (0, 0))) # qkv bias
    operands += [w_proj, b_proj]
    in_specs += [
        pl.BlockSpec((C, 128), lambda b: (0, 0)),                   # w_proj (bf16)
        pl.BlockSpec((1, 128), lambda b: (0, 0)),                   # b_proj
    ]

    y, attn = pl.pallas_call(
        kernel,
        grid=(B,),
        out_shape=(
            jax.ShapeDtypeStruct((B, N, 128), x.dtype),
            jax.ShapeDtypeStruct((B, H, N, N), attn_dtype),
        ),
        in_specs=in_specs,
        out_specs=(
            pl.BlockSpec((1, N, 128), lambda b: (b, 0, 0)),         # y (lane-dense, 128)
            pl.BlockSpec((1, H, N, N), lambda b: (b, 0, 0, 0)),     # attn
        ),
        scratch_shapes=[
            pltpu.VMEM((H, N, N), jnp.float32),                     # scores scratch
            pltpu.VMEM((N, C), jnp.float32),                        # head-concat context
        ],
        compiler_params=pltpu.CompilerParams(
            dimension_semantics=("parallel",),        # batch axis -> megacore on v7x
            vmem_limit_bytes=_vmem_limit_bytes(),
        ),
    )(*operands)
    return y, attn


# ----------------------------------------------------------------------------
# Reference (pure JAX) for a sanity check
# ----------------------------------------------------------------------------
def attention_ref(params, x, num_heads=8):
    B, N, C = x.shape
    H = num_heads
    Dh = C // H
    scale = Dh ** (-0.5)
    qkv = x @ params["w_qkv"]
    if "b_qkv" in params:
        qkv = qkv + params["b_qkv"]
    qkv = qkv.reshape(B, N, 3, H, Dh).transpose(2, 0, 3, 1, 4)
    q, k, v = qkv[0], qkv[1], qkv[2]
    attn = jnp.einsum("bhnd,bhmd->bhnm", q, k) * scale
    attn = jax.nn.softmax(attn, axis=-1)
    out = jnp.einsum("bhnm,bhmd->bhnd", attn, v)
    out = out.transpose(0, 2, 1, 3).reshape(B, N, C)
    y = out @ params["w_proj"] + params["b_proj"]
    return y, attn


if __name__ == "__main__":
    B, N, C, H = 2, 8, 32, 8   # batch, tokens, dim, heads -> head_dim = 4
    key = jax.random.PRNGKey(0)
    kx, kp = jax.random.split(key)
    x = jax.random.normal(kx, (B, N, C), jnp.float32)

    # --- qkv_bias=False path -------------------------------------------------
    params = init_attention_params(kp, C, num_heads=H, qkv_bias=False)
    y, attn = attention_forward(params, x, num_heads=H)
    y = jax.block_until_ready(y)
    attn = jax.block_until_ready(attn)
    y_ref, attn_ref_v = attention_ref(params, x, num_heads=H)
    assert y.shape == (B, N, 128) and attn.shape == (B, H, N, N)
    # bf16 MXU operands + approx reciprocal -> tolerance 2e-2 (per review).
    assert jnp.allclose(y, y_ref, atol=2e-2, rtol=2e-2)
    assert jnp.allclose(attn, attn_ref_v, atol=2e-2, rtol=2e-2)

    # --- qkv_bias=True path --------------------------------------------------
    params_b = init_attention_params(kp, C, num_heads=H, qkv_bias=True)
    params_b["b_qkv"] = jax.random.normal(jax.random.PRNGKey(1), (3 * C,), jnp.float32) * 0.02
    yb, attnb = attention_forward(params_b, x, num_heads=H)
    yb = jax.block_until_ready(yb)
    attnb = jax.block_until_ready(attnb)
    yb_ref, attnb_ref = attention_ref(params_b, x, num_heads=H)
    assert jnp.allclose(yb, yb_ref, atol=2e-2, rtol=2e-2)
    assert jnp.allclose(attnb, attnb_ref, atol=2e-2, rtol=2e-2)

    print("KERNEL_OK")
</pallas_src>

<mosaic_0001>
module attributes {stable_mosaic.version = 11 : i64} {
  func.func @_fused_attention_kernel(%arg0: i32, %arg1: memref<1x8x32xf32, #tpu.memory_space<vmem>>, %arg2: memref<32x96xbf16, #tpu.memory_space<vmem>>, %arg3: memref<32x128xbf16, #tpu.memory_space<vmem>>, %arg4: memref<1x128xf32, #tpu.memory_space<vmem>>, %arg5: memref<1x8x128xf32, #tpu.memory_space<vmem>>, %arg6: memref<1x8x8x8xf32, #tpu.memory_space<vmem>>, %arg7: memref<8x8x8xf32, #tpu.memory_space<vmem>>, %arg8: memref<8x32xf32, #tpu.memory_space<vmem>>) attributes {dimension_semantics = [#tpu.dimension_semantics<parallel>], iteration_bounds = array<i64: 2>, scalar_prefetch = 0 : i64, scratch_operands = 2 : i64, tpu.core_type = #tpu.core_type<tc>, window_params = [{transform_indices = @transform_0, window_bounds = array<i64: 1, 8, 32>}, {pipeline_mode = #tpu.pipeline_mode<synchronous>, transform_indices = @transform_1, window_bounds = array<i64: 32, 96>}, {pipeline_mode = #tpu.pipeline_mode<synchronous>, transform_indices = @transform_2, window_bounds = array<i64: 32, 128>}, {pipeline_mode = #tpu.pipeline_mode<synchronous>, transform_indices = @transform_3, window_bounds = array<i64: 1, 128>}, {transform_indices = @transform_4, window_bounds = array<i64: 1, 8, 128>}, {transform_indices = @transform_5, window_bounds = array<i64: 1, 8, 8, 8>}]} {
    %c0 = arith.constant 0 : index
    %c0_0 = arith.constant 0 : index
    %c0_1 = arith.constant 0 : index
    %0 = vector.load %arg1[%c0, %c0_0, %c0_1] : memref<1x8x32xf32, #tpu.memory_space<vmem>>, vector<1x8x32xf32>
    %1 = vector.shape_cast %0 : vector<1x8x32xf32> to vector<8x32xf32>
    %2 = arith.truncf %1 : vector<8x32xf32> to vector<8x32xbf16>
    %c0_2 = arith.constant 0 : index
    %c0_3 = arith.constant 0 : index
    %3 = vector.load %arg2[%c0_2, %c0_3] : memref<32x96xbf16, #tpu.memory_space<vmem>>, vector<32x96xbf16>
    %cst = arith.constant dense<0.000000e+00> : vector<8x96xf32>
    %4 = tpu.matmul %2, %3, %cst {dimension_numbers = #tpu.dot_dimension_numbers<[1], [0], [0], [1], [0, 0, 1, 1], [], []>} : vector<8x32xbf16>, vector<32x96xbf16>, vector<8x96xf32> -> vector<8x96xf32>
    %5 = vector.extract_strided_slice %4 {offsets = [0, 0], sizes = [8, 32], strides = [1, 1]} : vector<8x96xf32> to vector<8x32xf32>
    %cst_4 = arith.constant 5.000000e-01 : f32
    %6 = vector.broadcast %cst_4 : f32 to vector<8x32xf32>
    %7 = arith.mulf %5, %6 : vector<8x32xf32>
    %8 = vector.extract_strided_slice %4 {offsets = [0, 32], sizes = [8, 32], strides = [1, 1]} : vector<8x96xf32> to vector<8x32xf32>
    %9 = vector.extract_strided_slice %4 {offsets = [0, 64], sizes = [8, 32], strides = [1, 1]} : vector<8x96xf32> to vector<8x32xf32>
    %10 = arith.truncf %7 : vector<8x32xf32> to vector<8x32xbf16>
    %11 = arith.truncf %8 : vector<8x32xf32> to vector<8x32xbf16>
    %12 = arith.truncf %9 : vector<8x32xf32> to vector<8x32xbf16>
    %13 = vector.extract_strided_slice %10 {offsets = [0, 0], sizes = [8, 4], strides = [1, 1]} : vector<8x32xbf16> to vector<8x4xbf16>
    %14 = vector.extract_strided_slice %11 {offsets = [0, 0], sizes = [8, 4], strides = [1, 1]} : vector<8x32xbf16> to vector<8x4xbf16>
    %cst_5 = arith.constant dense<0.000000e+00> : vector<8x8xf32>
    %15 = tpu.matmul %13, %14, %cst_5 {dimension_numbers = #tpu.dot_dimension_numbers<[1], [1], [0], [0], [0, 0, 1, 0], [], []>} : vector<8x4xbf16>, vector<8x4xbf16>, vector<8x8xf32> -> vector<8x8xf32>
    %c0_6 = arith.constant 0 : index
    %c0_7 = arith.constant 0 : index
    %c0_8 = arith.constant 0 : index
    %16 = vector.load %arg7[%c0_6, %c0_7, %c0_8] : memref<8x8x8xf32, #tpu.memory_space<vmem>>, vector<1x8x8xf32>
    %17 = vector.shape_cast %16 : vector<1x8x8xf32> to vector<8x8xf32>
    %18 = vector.shape_cast %15 : vector<8x8xf32> to vector<1x8x8xf32>
    tpu.vector_store %arg7[%c0_6, %c0_7, %c0_8], %18 {strides = array<i32>} : memref<8x8x8xf32, #tpu.memory_space<vmem>>, vector<1x8x8xf32>,
    %19 = vector.extract_strided_slice %10 {offsets = [0, 4], sizes = [8, 4], strides = [1, 1]} : vector<8x32xbf16> to vector<8x4xbf16>
    %20 = vector.extract_strided_slice %11 {offsets = [0, 4], sizes = [8, 4], strides = [1, 1]} : vector<8x32xbf16> to vector<8x4xbf16>
    %cst_9 = arith.constant dense<0.000000e+00> : vector<8x8xf32>
    %21 = tpu.matmul %19, %20, %cst_9 {dimension_numbers = #tpu.dot_dimension_numbers<[1], [1], [0], [0], [0, 0, 1, 0], [], []>} : vector<8x4xbf16>, vector<8x4xbf16>, vector<8x8xf32> -> vector<8x8xf32>
    %c1 = arith.constant 1 : index
    %c0_10 = arith.constant 0 : index
    %c0_11 = arith.constant 0 : index
    %22 = vector.load %arg7[%c1, %c0_10, %c0_11] : memref<8x8x8xf32, #tpu.memory_space<vmem>>, vector<1x8x8xf32>
    %23 = vector.shape_cast %22 : vector<1x8x8xf32> to vector<8x8xf32>
    %24 = vector.shape_cast %21 : vector<8x8xf32> to vector<1x8x8xf32>
    tpu.vector_store %arg7[%c1, %c0_10, %c0_11], %24 {strides = array<i32>} : memref<8x8x8xf32, #tpu.memory_space<vmem>>, vector<1x8x8xf32>,
    %25 = vector.extract_strided_slice %10 {offsets = [0, 8], sizes = [8, 4], strides = [1, 1]} : vector<8x32xbf16> to vector<8x4xbf16>
    %26 = vector.extract_strided_slice %11 {offsets = [0, 8], sizes = [8, 4], strides = [1, 1]} : vector<8x32xbf16> to vector<8x4xbf16>
    %cst_12 = arith.constant dense<0.000000e+00> : vector<8x8xf32>
    %27 = tpu.matmul %25, %26, %cst_12 {dimension_numbers = #tpu.dot_dimension_numbers<[1], [1], [0], [0], [0, 0, 1, 0], [], []>} : vector<8x4xbf16>, vector<8x4xbf16>, vector<8x8xf32> -> vector<8x8xf32>
    %c2 = arith.constant 2 : index
    %c0_13 = arith.constant 0 : index
    %c0_14 = arith.constant 0 : index
    %28 = vector.load %arg7[%c2, %c0_13, %c0_14] : memref<8x8x8xf32, #tpu.memory_space<vmem>>, vector<1x8x8xf32>
    %29 = vector.shape_cast %28 : vector<1x8x8xf32> to vector<8x8xf32>
    %30 = vector.shape_cast %27 : vector<8x8xf32> to vector<1x8x8xf32>
    tpu.vector_store %arg7[%c2, %c0_13, %c0_14], %30 {strides = array<i32>} : memref<8x8x8xf32, #tpu.memory_space<vmem>>, vector<1x8x8xf32>,
    %31 = vector.extract_strided_slice %10 {offsets = [0, 12], sizes = [8, 4], strides = [1, 1]} : vector<8x32xbf16> to vector<8x4xbf16>
    %32 = vector.extract_strided_slice %11 {offsets = [0, 12], sizes = [8, 4], strides = [1, 1]} : vector<8x32xbf16> to vector<8x4xbf16>
    %cst_15 = arith.constant dense<0.000000e+00> : vector<8x8xf32>
    %33 = tpu.matmul %31, %32, %cst_15 {dimension_numbers = #tpu.dot_dimension_numbers<[1], [1], [0], [0], [0, 0, 1, 0], [], []>} : vector<8x4xbf16>, vector<8x4xbf16>, vector<8x8xf32> -> vector<8x8xf32>
    %c3 = arith.constant 3 : index
    %c0_16 = arith.constant 0 : index
    %c0_17 = arith.constant 0 : index
    %34 = vector.load %arg7[%c3, %c0_16, %c0_17] : memref<8x8x8xf32, #tpu.memory_space<vmem>>, vector<1x8x8xf32>
    %35 = vector.shape_cast %34 : vector<1x8x8xf32> to vector<8x8xf32>
    %36 = vector.shape_cast %33 : vector<8x8xf32> to vector<1x8x8xf32>
    tpu.vector_store %arg7[%c3, %c0_16, %c0_17], %36 {strides = array<i32>} : memref<8x8x8xf32, #tpu.memory_space<vmem>>, vector<1x8x8xf32>,
    %37 = vector.extract_strided_slice %10 {offsets = [0, 16], sizes = [8, 4], strides = [1, 1]} : vector<8x32xbf16> to vector<8x4xbf16>
    %38 = vector.extract_strided_slice %11 {offsets = [0, 16], sizes = [8, 4], strides = [1, 1]} : vector<8x32xbf16> to vector<8x4xbf16>
    %cst_18 = arith.constant dense<0.000000e+00> : vector<8x8xf32>
    %39 = tpu.matmul %37, %38, %cst_18 {dimension_numbers = #tpu.dot_dimension_numbers<[1], [1], [0], [0], [0, 0, 1, 0], [], []>} : vector<8x4xbf16>, vector<8x4xbf16>, vector<8x8xf32> -> vector<8x8xf32>
    %c4 = arith.constant 4 : index
    %c0_19 = arith.constant 0 : index
    %c0_20 = arith.constant 0 : index
    %40 = vector.load %arg7[%c4, %c0_19, %c0_20] : memref<8x8x8xf32, #tpu.memory_space<vmem>>, vector<1x8x8xf32>
    %41 = vector.shape_cast %40 : vector<1x8x8xf32> to vector<8x8xf32>
    %42 = vector.shape_cast %39 : vector<8x8xf32> to vector<1x8x8xf32>
    tpu.vector_store %arg7[%c4, %c0_19, %c0_20], %42 {strides = array<i32>} : memref<8x8x8xf32, #tpu.memory_space<vmem>>, vector<1x8x8xf32>,
    %43 = vector.extract_strided_slice %10 {offsets = [0, 20], sizes = [8, 4], strides = [1, 1]} : vector<8x32xbf16> to vector<8x4xbf16>
    %44 = vector.extract_strided_slice %11 {offsets = [0, 20], sizes = [8, 4], strides = [1, 1]} : vector<8x32xbf16> to vector<8x4xbf16>
    %cst_21 = arith.constant dense<0.000000e+00> : vector<8x8xf32>
    %45 = tpu.matmul %43, %44, %cst_21 {dimension_numbers = #tpu.dot_dimension_numbers<[1], [1], [0], [0], [0, 0, 1, 0], [], []>} : vector<8x4xbf16>, vector<8x4xbf16>, vector<8x8xf32> -> vector<8x8xf32>
    %c5 = arith.constant 5 : index
    %c0_22 = arith.constant 0 : index
    %c0_23 = arith.constant 0 : index
    %46 = vector.load %arg7[%c5, %c0_22, %c0_23] : memref<8x8x8xf32, #tpu.memory_space<vmem>>, vector<1x8x8xf32>
    %47 = vector.shape_cast %46 : vector<1x8x8xf32> to vector<8x8xf32>
    %48 = vector.shape_cast %45 : vector<8x8xf32> to vector<1x8x8xf32>
    tpu.vector_store %arg7[%c5, %c0_22, %c0_23], %48 {strides = array<i32>} : memref<8x8x8xf32, #tpu.memory_space<vmem>>, vector<1x8x8xf32>,
    %49 = vector.extract_strided_slice %10 {offsets = [0, 24], sizes = [8, 4], strides = [1, 1]} : vector<8x32xbf16> to vector<8x4xbf16>
    %50 = vector.extract_strided_slice %11 {offsets = [0, 24], sizes = [8, 4], strides = [1, 1]} : vector<8x32xbf16> to vector<8x4xbf16>
    %cst_24 = arith.constant dense<0.000000e+00> : vector<8x8xf32>
    %51 = tpu.matmul %49, %50, %cst_24 {dimension_numbers = #tpu.dot_dimension_numbers<[1], [1], [0], [0], [0, 0, 1, 0], [], []>} : vector<8x4xbf16>, vector<8x4xbf16>, vector<8x8xf32> -> vector<8x8xf32>
    %c6 = arith.constant 6 : index
    %c0_25 = arith.constant 0 : index
    %c0_26 = arith.constant 0 : index
    %52 = vector.load %arg7[%c6, %c0_25, %c0_26] : memref<8x8x8xf32, #tpu.memory_space<vmem>>, vector<1x8x8xf32>
    %53 = vector.shape_cast %52 : vector<1x8x8xf32> to vector<8x8xf32>
    %54 = vector.shape_cast %51 : vector<8x8xf32> to vector<1x8x8xf32>
    tpu.vector_store %arg7[%c6, %c0_25, %c0_26], %54 {strides = array<i32>} : memref<8x8x8xf32, #tpu.memory_space<vmem>>, vector<1x8x8xf32>,
    %55 = vector.extract_strided_slice %10 {offsets = [0, 28], sizes = [8, 4], strides = [1, 1]} : vector<8x32xbf16> to vector<8x4xbf16>
    %56 = vector.extract_strided_slice %11 {offsets = [0, 28], sizes = [8, 4], strides = [1, 1]} : vector<8x32xbf16> to vector<8x4xbf16>
    %cst_27 = arith.constant dense<0.000000e+00> : vector<8x8xf32>
    %57 = tpu.matmul %55, %56, %cst_27 {dimension_numbers = #tpu.dot_dimension_numbers<[1], [1], [0], [0], [0, 0, 1, 0], [], []>} : vector<8x4xbf16>, vector<8x4xbf16>, vector<8x8xf32> -> vector<8x8xf32>
    %c7 = arith.constant 7 : index
    %c0_28 = arith.constant 0 : index
    %c0_29 = arith.constant 0 : index
    %58 = vector.load %arg7[%c7, %c0_28, %c0_29] : memref<8x8x8xf32, #tpu.memory_space<vmem>>, vector<1x8x8xf32>
    %59 = vector.shape_cast %58 : vector<1x8x8xf32> to vector<8x8xf32>
    %60 = vector.shape_cast %57 : vector<8x8xf32> to vector<1x8x8xf32>
    tpu.vector_store %arg7[%c7, %c0_28, %c0_29], %60 {strides = array<i32>} : memref<8x8x8xf32, #tpu.memory_space<vmem>>, vector<1x8x8xf32>,
    %c0_30 = arith.constant 0 : index
    %c0_31 = arith.constant 0 : index
    %c0_32 = arith.constant 0 : index
    %61 = vector.load %arg7[%c0_30, %c0_31, %c0_32] : memref<8x8x8xf32, #tpu.memory_space<vmem>>, vector<8x8x8xf32>
    %cst_33 = arith.constant dense<0xFF800000> : vector<8x8xf32>
    %62 = vector.multi_reduction <maximumf>, %61, %cst_33 [2] : vector<8x8x8xf32> to vector<8x8xf32>
    %63 = vector.shape_cast %62 : vector<8x8xf32> to vector<8x8x1xf32>
    %64 = vector.broadcast %63 : vector<8x8x1xf32> to vector<8x8x8xf32>
    %65 = arith.subf %61, %64 : vector<8x8x8xf32>
    %66 = math.exp %65 : vector<8x8x8xf32>
    %cst_34 = arith.constant dense<0.000000e+00> : vector<8x8xf32>
    %67 = vector.multi_reduction <add>, %66, %cst_34 [2] : vector<8x8x8xf32> to vector<8x8xf32>
    %68 = vector.shape_cast %67 : vector<8x8xf32> to vector<8x8x1xf32>
    %69 = tpu.reciprocal %68 {approx = true} : vector<8x8x1xf32> -> vector<8x8x1xf32>
    %70 = vector.broadcast %69 : vector<8x8x1xf32> to vector<8x8x8xf32>
    %71 = arith.mulf %66, %70 : vector<8x8x8xf32>
    %c0_35 = arith.constant 0 : index
    %c0_36 = arith.constant 0 : index
    %c0_37 = arith.constant 0 : index
    %c0_38 = arith.constant 0 : index
    %72 = vector.load %arg6[%c0_35, %c0_36, %c0_37, %c0_38] : memref<1x8x8x8xf32, #tpu.memory_space<vmem>>, vector<1x8x8x8xf32>
    %73 = vector.shape_cast %72 : vector<1x8x8x8xf32> to vector<8x8x8xf32>
    %74 = vector.shape_cast %71 : vector<8x8x8xf32> to vector<1x8x8x8xf32>
    tpu.vector_store %arg6[%c0_35, %c0_36, %c0_37, %c0_38], %74 {strides = array<i32>} : memref<1x8x8x8xf32, #tpu.memory_space<vmem>>, vector<1x8x8x8xf32>,
    %75 = arith.truncf %71 : vector<8x8x8xf32> to vector<8x8x8xbf16>
    %76 = vector.extract_strided_slice %75 {offsets = [0, 0, 0], sizes = [1, 8, 8], strides = [1, 1, 1]} : vector<8x8x8xbf16> to vector<1x8x8xbf16>
    %77 = vector.shape_cast %76 : vector<1x8x8xbf16> to vector<8x8xbf16>
    %78 = vector.extract_strided_slice %12 {offsets = [0, 0], sizes = [8, 4], strides = [1, 1]} : vector<8x32xbf16> to vector<8x4xbf16>
    %cst_39 = arith.constant dense<0.000000e+00> : vector<8x4xf32>
    %79 = tpu.matmul %77, %78, %cst_39 {dimension_numbers = #tpu.dot_dimension_numbers<[1], [0], [0], [1], [0, 0, 1, 1], [], []>} : vector<8x8xbf16>, vector<8x4xbf16>, vector<8x4xf32> -> vector<8x4xf32>
    %c0_40 = arith.constant 0 : index
    %c0_41 = arith.constant 0 : index
    %80 = vector.load %arg8[%c0_40, %c0_41] : memref<8x32xf32, #tpu.memory_space<vmem>>, vector<8x4xf32>
    tpu.vector_store %arg8[%c0_40, %c0_41], %79 {strides = array<i32>} : memref<8x32xf32, #tpu.memory_space<vmem>>, vector<8x4xf32>,
    %81 = vector.extract_strided_slice %75 {offsets = [1, 0, 0], sizes = [1, 8, 8], strides = [1, 1, 1]} : vector<8x8x8xbf16> to vector<1x8x8xbf16>
    %82 = vector.shape_cast %81 : vector<1x8x8xbf16> to vector<8x8xbf16>
    %83 = vector.extract_strided_slice %12 {offsets = [0, 4], sizes = [8, 4], strides = [1, 1]} : vector<8x32xbf16> to vector<8x4xbf16>
    %cst_42 = arith.constant dense<0.000000e+00> : vector<8x4xf32>
    %84 = tpu.matmul %82, %83, %cst_42 {dimension_numbers = #tpu.dot_dimension_numbers<[1], [0], [0], [1], [0, 0, 1, 1], [], []>} : vector<8x8xbf16>, vector<8x4xbf16>, vector<8x4xf32> -> vector<8x4xf32>
    %c0_43 = arith.constant 0 : index
    %c4_44 = arith.constant 4 : index
    %85 = vector.load %arg8[%c0_43, %c4_44] : memref<8x32xf32, #tpu.memory_space<vmem>>, vector<8x4xf32>
    tpu.vector_store %arg8[%c0_43, %c4_44], %84 {strides = array<i32>} : memref<8x32xf32, #tpu.memory_space<vmem>>, vector<8x4xf32>,
    %86 = vector.extract_strided_slice %75 {offsets = [2, 0, 0], sizes = [1, 8, 8], strides = [1, 1, 1]} : vector<8x8x8xbf16> to vector<1x8x8xbf16>
    %87 = vector.shape_cast %86 : vector<1x8x8xbf16> to vector<8x8xbf16>
    %88 = vector.extract_strided_slice %12 {offsets = [0, 8], sizes = [8, 4], strides = [1, 1]} : vector<8x32xbf16> to vector<8x4xbf16>
    %cst_45 = arith.constant dense<0.000000e+00> : vector<8x4xf32>
    %89 = tpu.matmul %87, %88, %cst_45 {dimension_numbers = #tpu.dot_dimension_numbers<[1], [0], [0], [1], [0, 0, 1, 1], [], []>} : vector<8x8xbf16>, vector<8x4xbf16>, vector<8x4xf32> -> vector<8x4xf32>
    %c0_46 = arith.constant 0 : index
    %c8 = arith.constant 8 : index
    %90 = vector.load %arg8[%c0_46, %c8] : memref<8x32xf32, #tpu.memory_space<vmem>>, vector<8x4xf32>
    tpu.vector_store %arg8[%c0_46, %c8], %89 {strides = array<i32>} : memref<8x32xf32, #tpu.memory_space<vmem>>, vector<8x4xf32>,
    %91 = vector.extract_strided_slice %75 {offsets = [3, 0, 0], sizes = [1, 8, 8], strides = [1, 1, 1]} : vector<8x8x8xbf16> to vector<1x8x8xbf16>
    %92 = vector.shape_cast %91 : vector<1x8x8xbf16> to vector<8x8xbf16>
    %93 = vector.extract_strided_slice %12 {offsets = [0, 12], sizes = [8, 4], strides = [1, 1]} : vector<8x32xbf16> to vector<8x4xbf16>
    %cst_47 = arith.constant dense<0.000000e+00> : vector<8x4xf32>
    %94 = tpu.matmul %92, %93, %cst_47 {dimension_numbers = #tpu.dot_dimension_numbers<[1], [0], [0], [1], [0, 0, 1, 1], [], []>} : vector<8x8xbf16>, vector<8x4xbf16>, vector<8x4xf32> -> vector<8x4xf32>
    %c0_48 = arith.constant 0 : index
    %c12 = arith.constant 12 : index
    %95 = vector.load %arg8[%c0_48, %c12] : memref<8x32xf32, #tpu.memory_space<vmem>>, vector<8x4xf32>
    tpu.vector_store %arg8[%c0_48, %c12], %94 {strides = array<i32>} : memref<8x32xf32, #tpu.memory_space<vmem>>, vector<8x4xf32>,
    %96 = vector.extract_strided_slice %75 {offsets = [4, 0, 0], sizes = [1, 8, 8], strides = [1, 1, 1]} : vector<8x8x8xbf16> to vector<1x8x8xbf16>
    %97 = vector.shape_cast %96 : vector<1x8x8xbf16> to vector<8x8xbf16>
    %98 = vector.extract_strided_slice %12 {offsets = [0, 16], sizes = [8, 4], strides = [1, 1]} : vector<8x32xbf16> to vector<8x4xbf16>
    %cst_49 = arith.constant dense<0.000000e+00> : vector<8x4xf32>
    %99 = tpu.matmul %97, %98, %cst_49 {dimension_numbers = #tpu.dot_dimension_numbers<[1], [0], [0], [1], [0, 0, 1, 1], [], []>} : vector<8x8xbf16>, vector<8x4xbf16>, vector<8x4xf32> -> vector<8x4xf32>
    %c0_50 = arith.constant 0 : index
    %c16 = arith.constant 16 : index
    %100 = vector.load %arg8[%c0_50, %c16] : memref<8x32xf32, #tpu.memory_space<vmem>>, vector<8x4xf32>
    tpu.vector_store %arg8[%c0_50, %c16], %99 {strides = array<i32>} : memref<8x32xf32, #tpu.memory_space<vmem>>, vector<8x4xf32>,
    %101 = vector.extract_strided_slice %75 {offsets = [5, 0, 0], sizes = [1, 8, 8], strides = [1, 1, 1]} : vector<8x8x8xbf16> to vector<1x8x8xbf16>
    %102 = vector.shape_cast %101 : vector<1x8x8xbf16> to vector<8x8xbf16>
    %103 = vector.extract_strided_slice %12 {offsets = [0, 20], sizes = [8, 4], strides = [1, 1]} : vector<8x32xbf16> to vector<8x4xbf16>
    %cst_51 = arith.constant dense<0.000000e+00> : vector<8x4xf32>
    %104 = tpu.matmul %102, %103, %cst_51 {dimension_numbers = #tpu.dot_dimension_numbers<[1], [0], [0], [1], [0, 0, 1, 1], [], []>} : vector<8x8xbf16>, vector<8x4xbf16>, vector<8x4xf32> -> vector<8x4xf32>
    %c0_52 = arith.constant 0 : index
    %c20 = arith.constant 20 : index
    %105 = vector.load %arg8[%c0_52, %c20] : memref<8x32xf32, #tpu.memory_space<vmem>>, vector<8x4xf32>
    tpu.vector_store %arg8[%c0_52, %c20], %104 {strides = array<i32>} : memref<8x32xf32, #tpu.memory_space<vmem>>, vector<8x4xf32>,
    %106 = vector.extract_strided_slice %75 {offsets = [6, 0, 0], sizes = [1, 8, 8], strides = [1, 1, 1]} : vector<8x8x8xbf16> to vector<1x8x8xbf16>
    %107 = vector.shape_cast %106 : vector<1x8x8xbf16> to vector<8x8xbf16>
    %108 = vector.extract_strided_slice %12 {offsets = [0, 24], sizes = [8, 4], strides = [1, 1]} : vector<8x32xbf16> to vector<8x4xbf16>
    %cst_53 = arith.constant dense<0.000000e+00> : vector<8x4xf32>
    %109 = tpu.matmul %107, %108, %cst_53 {dimension_numbers = #tpu.dot_dimension_numbers<[1], [0], [0], [1], [0, 0, 1, 1], [], []>} : vector<8x8xbf16>, vector<8x4xbf16>, vector<8x4xf32> -> vector<8x4xf32>
    %c0_54 = arith.constant 0 : index
    %c24 = arith.constant 24 : index
    %110 = vector.load %arg8[%c0_54, %c24] : memref<8x32xf32, #tpu.memory_space<vmem>>, vector<8x4xf32>
    tpu.vector_store %arg8[%c0_54, %c24], %109 {strides = array<i32>} : memref<8x32xf32, #tpu.memory_space<vmem>>, vector<8x4xf32>,
    %111 = vector.extract_strided_slice %75 {offsets = [7, 0, 0], sizes = [1, 8, 8], strides = [1, 1, 1]} : vector<8x8x8xbf16> to vector<1x8x8xbf16>
    %112 = vector.shape_cast %111 : vector<1x8x8xbf16> to vector<8x8xbf16>
    %113 = vector.extract_strided_slice %12 {offsets = [0, 28], sizes = [8, 4], strides = [1, 1]} : vector<8x32xbf16> to vector<8x4xbf16>
    %cst_55 = arith.constant dense<0.000000e+00> : vector<8x4xf32>
    %114 = tpu.matmul %112, %113, %cst_55 {dimension_numbers = #tpu.dot_dimension_numbers<[1], [0], [0], [1], [0, 0, 1, 1], [], []>} : vector<8x8xbf16>, vector<8x4xbf16>, vector<8x4xf32> -> vector<8x4xf32>
    %c0_56 = arith.constant 0 : index
    %c28 = arith.constant 28 : index
    %115 = vector.load %arg8[%c0_56, %c28] : memref<8x32xf32, #tpu.memory_space<vmem>>, vector<8x4xf32>
    tpu.vector_store %arg8[%c0_56, %c28], %114 {strides = array<i32>} : memref<8x32xf32, #tpu.memory_space<vmem>>, vector<8x4xf32>,
    %c0_57 = arith.constant 0 : index
    %c0_58 = arith.constant 0 : index
    %116 = vector.load %arg8[%c0_57, %c0_58] : memref<8x32xf32, #tpu.memory_space<vmem>>, vector<8x32xf32>
    %117 = arith.truncf %116 : vector<8x32xf32> to vector<8x32xbf16>
    %c0_59 = arith.constant 0 : index
    %c0_60 = arith.constant 0 : index
    %118 = vector.load %arg3[%c0_59, %c0_60] : memref<32x128xbf16, #tpu.memory_space<vmem>>, vector<32x128xbf16>
    %cst_61 = arith.constant dense<0.000000e+00> : vector<8x128xf32>
    %119 = tpu.matmul %117, %118, %cst_61 {dimension_numbers = #tpu.dot_dimension_numbers<[1], [0], [0], [1], [0, 0, 1, 1], [], []>} : vector<8x32xbf16>, vector<32x128xbf16>, vector<8x128xf32> -> vector<8x128xf32>
    %c0_62 = arith.constant 0 : index
    %c0_63 = arith.constant 0 : index
    %120 = vector.load %arg4[%c0_62, %c0_63] : memref<1x128xf32, #tpu.memory_space<vmem>>, vector<1x128xf32>
    %121 = vector.broadcast %120 : vector<1x128xf32> to vector<8x128xf32>
    %122 = arith.addf %119, %121 : vector<8x128xf32>
    %c0_64 = arith.constant 0 : index
    %c0_65 = arith.constant 0 : index
    %c0_66 = arith.constant 0 : index
    %123 = vector.load %arg5[%c0_64, %c0_65, %c0_66] : memref<1x8x128xf32, #tpu.memory_space<vmem>>, vector<1x8x128xf32>
    %124 = vector.shape_cast %123 : vector<1x8x128xf32> to vector<8x128xf32>
    %125 = vector.shape_cast %122 : vector<8x128xf32> to vector<1x8x128xf32>
    tpu.vector_store %arg5[%c0_64, %c0_65, %c0_66], %125 {strides = array<i32>} : memref<1x8x128xf32, #tpu.memory_space<vmem>>, vector<1x8x128xf32>,
    return
  }
  func.func @transform_0(%arg0: i32) -> (i32, i32, i32) {
    %c0_i32 = arith.constant 0 : i32
    %c0_i32_0 = arith.constant 0 : i32
    %c0_i32_1 = arith.constant 0 : i32
    return %arg0, %c0_i32, %c0_i32_0 : i32, i32, i32
  }
  func.func @transform_1(%arg0: i32) -> (i32, i32) {
    %c0_i32 = arith.constant 0 : i32
    %c0_i32_0 = arith.constant 0 : i32
    %c0_i32_1 = arith.constant 0 : i32
    return %c0_i32, %c0_i32_0 : i32, i32
  }
  func.func @transform_2(%arg0: i32) -> (i32, i32) {
    %c0_i32 = arith.constant 0 : i32
    %c0_i32_0 = arith.constant 0 : i32
    %c0_i32_1 = arith.constant 0 : i32
    return %c0_i32, %c0_i32_0 : i32, i32
  }
  func.func @transform_3(%arg0: i32) -> (i32, i32) {
    %c0_i32 = arith.constant 0 : i32
    %c0_i32_0 = arith.constant 0 : i32
    %c0_i32_1 = arith.constant 0 : i32
    return %c0_i32, %c0_i32_0 : i32, i32
  }
  func.func @transform_4(%arg0: i32) -> (i32, i32, i32) {
    %c0_i32 = arith.constant 0 : i32
    %c0_i32_0 = arith.constant 0 : i32
    %c0_i32_1 = arith.constant 0 : i32
    return %arg0, %c0_i32, %c0_i32_0 : i32, i32, i32
  }
  func.func @transform_5(%arg0: i32) -> (i32, i32, i32, i32) {
    %c0_i32 = arith.constant 0 : i32
    %c0_i32_0 = arith.constant 0 : i32
    %c0_i32_1 = arith.constant 0 : i32
    %c0_i32_2 = arith.constant 0 : i32
    return %arg0, %c0_i32, %c0_i32_0, %c0_i32_1 : i32, i32, i32, i32
  }
}

</mosaic_0001>

<bundles_post_ra>
// kernel: tpu_custom_call.1
= control target key start
LH: loop header
LB: loop body
LE: loop exit
PB: predicated region body
PF: predicated region fallthrough
CT: control target
= control target key end

     0   :  { %11 = vsyncpa [#allocation5], 0  ;;  %s1811_s0 = inlined_call_operand.hbm [shape: f32[2,8,32], index: 0, kind: input, shape index: {}]   ;;  %s1812_s1 = inlined_call_operand.hbm [shape: bf16[32,96], index: 1, kind: input, shape index: {}]   ;;  %s1813_s2 = inlined_call_operand.hbm [shape: bf16[32,128], index: 2, kind: input, shape index: {}]   ;;  %s1814_s3 = inlined_call_operand.vmem [shape: f32[1,128], index: 3, kind: input, shape index: {}]   ;;  %s1815_s4 = inlined_call_operand.hbm [shape: f32[2,8,128], index: 4, kind: output, shape index: {0}]   ;;  %s1816_s5 = inlined_call_operand.hbm [shape: f32[2,8,8,8], index: 5, kind: output, shape index: {1}]  }
   0x1   :  { %13 = vsyncpa [#allocation5 + $0x1], 0 }
   0x2   :  { %14 = vsyncpa [#allocation8], 0 }
   0x3   :  { %15 = vsyncpa [#allocation6], 0 }
   0x4   :  { %17 = vsyncpa [#allocation6 + $0x1], 0 }
   0x5   :  { %18 = vsyncpa [#allocation12], 0 }
   0x6   :  { %20 = vsyncpa [#allocation12 + $0x1], 0  ;;  %s1509_s18 = smov 0   ;;  %s1511_s19 = smov 0  }
   0x7   :  { %s1513_s20 = smov 0   ;;  %s1515_s21 = smov 0  }
   0x8 LB: > { %s183_s24 = sshll.u32 %s1812_s1, 4  ;;  %s1533_s25 = sadd.s32 4294967295, %s1442_s21   ;;  %s1442_s21 = sphi %s1515_s21, %s1831_s21   ;;  %s1438_s20 = sphi %s1513_s20, %s1830_s20   ;;  %s1434_s19 = sphi %s1511_s19, %s1829_s19   ;;  %s1430_s18 = sphi %s1509_s18, %s1828_s18   ;;  %s184_s24 = int_to_ptr.hbm [resolvable:$true] %s183_s24 }
   0x9   : > { %p1054_p0 = scmp.ge.s32.totalorder %s1442_s21, 1  ;;  %p47_p1 = scmp.eq.s32.totalorder %s1533_s25, 0 }
   0xa   : > { %p172_p2 = scmp.lt.s32.totalorder %s1442_s21, 3  ;;  %s1444_s27 = smov [#allocation7]  }
   0xb   : > { %s185_s28 = sshll.u32 %s1444_s27, 4  ;;  %s197_s6 = sshll.u32 %s1813_s2, 4  ;;  %s186_s28 = int_to_ptr.vmem [resolvable:$true] %s185_s28  ;;  %s198_s6 = int_to_ptr.hbm [resolvable:$true] %s197_s6 }
   0xc   : > { %p1538_p3 = pnand %p1054_p0, %p172_p2  ;;  %s1445_s7 = smov [#allocation9]  }
   0xd   : > { %s199_s8 = sshll.u32 %s1445_s7, 4  ;;  %s1446_s9 = smov 64   ;;  %s200_s8 = int_to_ptr.vmem [resolvable:$true] %s199_s8 }
   0xe   : > { %p1126_p4 = pneg %p1538_p3  ;;  %s1447_s10 = smov 4  }
   0xf   : > { %s1053_s11 = sadd.s32 4294967294, %s1442_s21   ;;  %s1552_s12 = sadd.s32 1, %s1442_s21  }
  0x10   : > { %p1127_p6 = pnand %p1126_p4, %p47_p1  ;;  %s30_s13 = ssub.s32 %s1442_s21, %s1552_s12 }
  0x11   : > { %s33_s14 = sadd.s32 1, %s1438_s20  ;;  %p31_p7 = scmp.eq.s32.totalorder %s30_s13, 0 }
  0x12   : > { %1129 = dma.hbm_to_vmem [thread:$0]  (!%p1127_p6), %s184_s24, 256, %s186_s28, [#allocation8], %s1446_s9, %s1446_s9, %s1447_s10  }
  0x13   : > { %1132 = dma.hbm_to_vmem [thread:$0]  (!%p1127_p6), %s198_s6, 256, %s200_s8, [#allocation8], %s1446_s9, %s1446_s9, %s1447_s10  }
  0x14   : > { %p40_p8 = scmp.ne.s32.totalorder %s1438_s20, %s1434_s19  ;;  %p41_p9 = scmp.eq.s32.totalorder %s1442_s21, 0 }
  0x15   : > { %p46_p10 = scmp.ne.s32.totalorder %s1434_s19, %s1430_s18  ;;  %p133_p13 = scmp.eq.s32.totalorder %s1533_s25, 1 }
  0x16   : > { %s1563_s15 = scalar_select %p31_p7, %s1438_s20, %s33_s14  }
  0x17   : > { %p1565_p11 = por %p41_p9, %p40_p8  ;;  %p1571_p12 = por %p47_p1, %p46_p10 }
  0x18   : > { %p139_p0 = scmp.eq.s32.totalorder %s1053_s11, 1  ;;  %p1146_p2 = scmp.lt.s32.totalorder %s1442_s21, 2 }
  0x19   : > { %s216_s22 = sand.u32 1, %s1438_s20   ;;  %p1578_p4 = por %p133_p13, %p40_p8 }
  0x1a   : > { %p1582_p6 = por %p139_p0, %p46_p10  ;;  %s1058_s27 = sshll.u32 %s216_s22, 3 }
  0x1b   : > { %s1059_s28 = sshll.u32 %s1442_s21, 3  ;;  %s220_s7 = scalar_lea.vmem [#allocation4], %s1058_s27 }
  0x1c   : > { %s224_s6 = scalar_lea.hbm %s1811_s0, %s1059_s28  ;;  %s228_s8 = sshll.u32 %s220_s7, 4  ;;  %s229_s8 = int_to_ptr.vmem [resolvable:$true] %s228_s8 }
  0x1d   : > { %s226_s9 = sshll.u32 %s224_s6, 4  ;;  %p1592_p7 = pnand %p1146_p2, %p1565_p11  ;;  %s227_s9 = int_to_ptr.hbm [resolvable:$true] %s226_s9 }
  0x1e   : > { %s217_s11 = scalar_lea.sflag [#allocation5], %s216_s22  ;;  %s1310_s13 = sshra.s32 %s227_s9, 4  ;;  %s1311_s13 = int_to_ptr.hbm [resolvable:$true] %s1310_s13 }
  0x1f   : > { %s1312_s14 = scalar_lea.hbm %s1311_s13, 8  ;;  %p1314_p9 = pneg %p1592_p7 }
  0x20   : > { %p1313_p8 = scmp.ne.s32.totalorder %s1311_s13, %s1312_s14  ;;  %s1317_s29 = scalar_lea.hbm %s1811_s0, 16 }
  0x21   : > { %p1318_p11 = scmp.lt.s32.totalorder %s1311_s13, %s1811_s0  ;;  %p1319_p0 = scmp.lt.s32.totalorder %s1317_s29, %s1312_s14 }
  0x22   : > { %p1315_p10 = pnand %p1314_p9, %p1313_p8 }
  0x23   : > { %p1320_p2 = por %p1319_p0, %p1318_p11 }
  0x24   : > { %p1316_p13 = pneg %p1315_p10 }
  0x26   : > { %p1321_p5 = pnand %p1320_p2, %p1316_p13 }
  0x28   : > { %1324 = shalt.err (!%p1321_p5)
}
  0x29   : > { %1136 = dma.hbm_to_vmem [thread:$0]  (!%p1592_p7), %s227_s9, 128, %s229_s8, %s217_s11  }
  0x2a   : > { %237 = sbr.rel (%p1538_p3) target bundleno = 1176 (0x498), region = 36  ;;  %s1609_s22 = sand.u32 (!%p1538_p3), 1, %s1434_s19  }
  0x2b   : > { %s1817_s6 = sshll.u32 (!%p1538_p3), %s1609_s22, 3  ;;  %s240_s7 = scalar_lea.sflag (!%p1538_p3), [#allocation5], %s1609_s22 }
  0x2c   : > { %s243_s13 = scalar_lea.vmem (!%p1538_p3), [#allocation4], %s1817_s6 }
  0x2f   : > { %1413 = dma.done.wait (%p1571_p12), %s240_s7, 128  }
  0x30   : > { %1415 = vsyncadd (%p1571_p12), %s240_s7, 4294967168 }
  0x31   : > { %1417 = dma.done.wait (%p47_p1), [#allocation8], 512  }
  0x32   : > { %1419 = vsyncadd (%p47_p1), [#allocation8], 4294966784  ;;  %v1108_v0 = vld [vmem:[#allocation7 + $0x8] sm:$0xff]  ;;  %v1107_v1 = vld [vmem:[#allocation7] sm:$0xff]  ;;  %vm305_vm0 = vcmask 261120   ;;  %s1448_s26 = smov 96  }
  0x33   : > { %315 = vmatpush.bf16.msra.mxu0 %v1108_v0  ;;  %v287_v2 = vld [vmem:[%s243_s13] sm:$0xff]  ;;  %s1449_s17 = smov 92   ;;  %s1450_s8 = smov 124   ;;  %vm330_vm1 = vcmask 31744   ;;  %vm647_vm2 = vcmask 1043456   ;;  %vm350_vm3 = vcmask 64512  }
  0x34   : > { %v288_v3 = vpack.c.bf16 %v287_v2, %v287_v2  ;;  %s1451_s9 = smov 84   ;;  %s1452_s10 = smov 88   ;;  %vm690_vm4 = vcmask 64544   ;;  %vm717_vm5 = vcmask 97344   ;;  %vm744_vm6 = vcmask 130144  }
  0x35   : > { %s1453_s11 = smov 120   ;;  %s1454_s14 = smov 76   ;;  %vm771_vm7 = vcmask 162944   ;;  %vm798_vm8 = vcmask 195744   ;;  %vm825_vm9 = vcmask 228544   ;;  %vm852_vm10 = vcmask 261344  }
  0x36   : > { %s1455_s27 = smov 116   ;;  %s1456_s28 = smov 72  }
  0x37   : > { %316 = vmatpush.bf16.msra.mxu0 %v1107_v1  ;;  %s1457_s29 = smov 108   ;;  %s1458_s30 = smov 80  }
  0x38   : > { %s1459_s16 = smov 104   ;;  %s1460_s7 = smov 68  }
  0x39   : > { %s1461_s13 = smov 100  }
  0x3a   : > { %1074 = vmatmul.msk.bf16.vlgmr.msra.gmra.mxu0 %vm305_vm0, %v288_v3 }
  0xb7   : > { %v318_v4 = vpop.f32.mrf.mxu0 }
  0xb8   : > { %v322_v5 = vmul.f32 0.5, %v318_v4  ;;  %v324_v6 = vpack.c.bf16 %v318_v4, %v318_v4 }
  0xba   : > { %v323_v7 = vpack.c.bf16 %v322_v5, %v322_v5  ;;  %v326_v8 = vunpack.c.l.b16 %v324_v6 }
  0xbc   : > { %v1624_v9 = vpack.c.b16 %v326_v8, %v326_v8  ;;  %v353_v10 = vunpack.c.l.b16 %v323_v7 }
  0xbe   : > { %v354_v11 = vpack.c.b16 %v353_v10, %v353_v10  ;;  %328 = vrot.lane.b32.xlu2 %v1624_v9, %s1448_s26  ;;  %357 = vrot.lane.b32.xlu0 %v1624_v9, %s1449_s17  ;;  %s1462_s26 = smov 112   ;;  %s1463_s17 = smov 56  }
  0xbf   : > { %v320_v12 = vpop.f32.mrf.mxu0 }
  0xc0   : > { %355 = vrot.lane.b32.xlu1 %v354_v11, %s1450_s8  ;;  %s1464_s8 = smov 60  }
  0xc6   : > { %407 = vrot.lane.b32.xlu2 %v1624_v9, %s1451_s9  ;;  %382 = vrot.lane.b32.xlu0 %v1624_v9, %s1452_s10  ;;  %s1465_s9 = smov 64   ;;  %s1466_s10 = smov 52  }
  0xc8   : > { %380 = vrot.lane.b32.xlu1 %v354_v11, %s1453_s11  ;;  %s1467_s11 = smov 48  }
  0xce   : > { %457 = vrot.lane.b32.xlu0 %v1624_v9, %s1454_s14  ;;  %405 = vrot.lane.b32.xlu2 %v354_v11, %s1455_s27  ;;  %s1468_s14 = smov 40   ;;  %s1469_s27 = smov 36  }
  0xd0   : > { %482 = vrot.lane.b32.xlu1 %v1624_v9, %s1456_s28  ;;  %s1065_s28 = sshll.u32 %s1609_s22, 6 }
  0xd6   : > { %455 = vrot.lane.b32.xlu0 %v354_v11, %s1457_s29  ;;  %432 = vrot.lane.b32.xlu2 %v1624_v9, %s1458_s30  ;;  %s1715_s29 = scalar_lea.vmem [#allocation11], %s1065_s28  ;;  %s1470_s30 = smov 44  }
  0xd7   : > { %s925_s28 = sshll.u32 %s1715_s29, 4  ;;  %s926_s28 = int_to_ptr.vmem [resolvable:$true] %s925_s28 }
  0xd8   : > { %480 = vrot.lane.b32.xlu1 %v354_v11, %s1459_s16  ;;  %s1471_s16 = smov 12  }
  0xde   : > { %507 = vrot.lane.b32.xlu0 %v1624_v9, %s1460_s7  ;;  %505 = vrot.lane.b32.xlu2 %v354_v11, %s1461_s13  ;;  %s1472_s7 = smov 4   ;;  %s1818_s13 = smov 8  }
  0xe0   : > { %430 = vrot.lane.b32.xlu1 %v354_v11, %s1462_s26  ;;  %s1474_s26 = smov 16  }
  0xe6   : > { %692 = vrot.lane.b32.xlu0 %v1624_v9, %s1463_s17  ;;  %665 = vrot.lane.b32.xlu2 %v1624_v9, %s1464_s8  ;;  %s1475_s17 = smov 28   ;;  %s1476_s8 = smov 24  }
 0x118   : > { %v329_v13 = vpop.permute.xlu2 %328 }
 0x119   : > { %v335_v14 = vsel %vm330_vm1, %v329_v13, 0 }
 0x11a   : > { %344 = vmatpush.bf16.xpose.msra.mxu1 %v335_v14 }
 0x120   : > { %v408_v15 = vpop.permute.xlu2 %407 }
 0x121   : > { %1075 = vmatmul.msk.bf16.vlgmr.msra.gmra.mxu1 %vm330_vm1, %v323_v7  ;;  %v413_v16 = vsel %vm330_vm1, %v408_v15, 0 }
 0x122   : > { %422 = vmatpush.bf16.xpose.msrb.mxu0 %v413_v16 }
 0x128   : > { %v406_v17 = vpop.permute.xlu2 %405 }
 0x129   : > { %1078 = vmatmul.msk.bf16.vlgmr.msrb.gmra.mxu0 %vm330_vm1, %v406_v17 }
 0x130   : > { %v358_v18 = vpop.permute.xlu0 %357  ;;  %v433_v19 = vpop.permute.xlu2 %432 }
 0x131   : > { %v363_v20 = vsel %vm330_vm1, %v358_v18, 0  ;;  %v438_v21 = vsel %vm330_vm1, %v433_v19, 0 }
 0x132   : > { %372 = vmatpush.bf16.xpose.msra.mxu2 %v363_v20  ;;  %447 = vmatpush.bf16.xpose.msrb.mxu1 %v438_v21  ;;  %v356_v22 = vpop.permute.xlu1 %355 }
 0x138   : > { %v383_v23 = vpop.permute.xlu0 %382  ;;  %v506_v24 = vpop.permute.xlu2 %505 }
 0x139   : > { %1076 = vmatmul.msk.bf16.vlgmr.msra.gmra.mxu2 %vm330_vm1, %v356_v22  ;;  %v388_v25 = vsel %vm330_vm1, %v383_v23, 0 }
 0x13a   : > { %397 = vmatpush.bf16.xpose.msra.mxu3 %v388_v25  ;;  %v381_v26 = vpop.permute.xlu1 %380 }
 0x140   : > { %v458_v27 = vpop.permute.xlu0 %457  ;;  %v666_v28 = vpop.permute.xlu2 %665 }
 0x141   : > { %v671_v29 = vsel %vm647_vm2, %v666_v28, 0  ;;  %1077 = vmatmul.msk.bf16.vlgmr.msra.gmra.mxu3 %vm330_vm1, %v381_v26  ;;  %v463_v30 = vsel %vm330_vm1, %v458_v27, 0 }
 0x142   : > { %472 = vmatpush.bf16.xpose.msrb.mxu2 %v463_v30  ;;  %v483_v31 = vpop.permute.xlu1 %482 }
 0x143   : > { %v488_v32 = vsel %vm330_vm1, %v483_v31, 0 }
 0x144   : > { %497 = vmatpush.bf16.xpose.msrb.mxu3 %v488_v32 }
 0x148   : > { %v456_v33 = vpop.permute.xlu0 %455 }
 0x149   : > { %1080 = vmatmul.msk.bf16.vlgmr.msrb.gmra.mxu2 %vm330_vm1, %v456_v33 }
 0x14a   : > { %680 = vmatpush.bf16.msra.mxu2 %v671_v29  ;;  %v481_v34 = vpop.permute.xlu1 %480 }
 0x150   : > { %v508_v35 = vpop.permute.xlu0 %507 }
 0x151   : > { %v513_v36 = vsel %vm330_vm1, %v508_v35, 0  ;;  %1081 = vmatmul.msk.bf16.vlgmr.msrb.gmra.mxu3 %vm330_vm1, %v481_v34 }
 0x152   : > { %522 = vmatpush.bf16.xpose.msra.mxu0 %v513_v36  ;;  %v431_v37 = vpop.permute.xlu1 %430 }
 0x153   : > { %1079 = vmatmul.msk.bf16.vlgmr.msrb.gmra.mxu1 %vm330_vm1, %v431_v37 }
 0x158   : > { %v693_v38 = vpop.permute.xlu0 %692 }
 0x159   : > { %v698_v39 = vsel %vm647_vm2, %v693_v38, 0  ;;  %1082 = vmatmul.msk.bf16.vlgmr.msra.gmra.mxu0 %vm330_vm1, %v506_v24 }
 0x15a   : > { %707 = vmatpush.bf16.msra.mxu3 %v698_v39 }
 0x19e   : > { %v346_v40 = vpop.f32.mrf.mxu1 }
 0x19f   : > { %351 = vst.msk [vmem:[#allocation2] sm:$0xff] %vm350_vm3, %v346_v40 }
 0x1a6   : > { %v348_v41 = vpop.f32.mrf.mxu1  ;;  %v424_v42 = vpop.f32.mrf.mxu0  ;;  %v530_v43 = vld [vmem:[#allocation2] sm:$0xff] }
 0x1a7   : > { %429 = vst.msk [vmem:[#allocation2 + $0x18] sm:$0xff] %vm350_vm3, %v424_v42  ;;  %v538_v44 = vsel %vm350_vm3, %v530_v43, -inf }
 0x1a8   : > { %539 = vmax.xlane.f32.xlu2 %v538_v44 }
 0x1ae   : > { %v426_v45 = vpop.f32.mrf.mxu0  ;;  %v533_v46 = vld [vmem:[#allocation2 + $0x18] sm:$0xff] }
 0x1af   : > { %v547_v47 = vsel %vm350_vm3, %v533_v46, -inf }
 0x1b0   : > { %548 = vmax.xlane.f32.xlu2 %v547_v47 }
 0x1bc   : > { %v374_v48 = vpop.f32.mrf.mxu2 }
 0x1bd   : > { %379 = vst.msk [vmem:[#allocation2 + $0x8] sm:$0xff] %vm350_vm3, %v374_v48 }
 0x1c4   : > { %v376_v49 = vpop.f32.mrf.mxu2  ;;  %v399_v50 = vpop.f32.mrf.mxu3  ;;  %v531_v51 = vld [vmem:[#allocation2 + $0x8] sm:$0xff] }
 0x1c5   : > { %404 = vst.msk [vmem:[#allocation2 + $0x10] sm:$0xff] %vm350_vm3, %v399_v50  ;;  %v541_v52 = vsel %vm350_vm3, %v531_v51, -inf }
 0x1c6   : > { %542 = vmax.xlane.f32.xlu0 %v541_v52 }
 0x1cc   : > { %v401_v53 = vpop.f32.mrf.mxu3  ;;  %v474_v54 = vpop.f32.mrf.mxu2  ;;  %v532_v55 = vld [vmem:[#allocation2 + $0x10] sm:$0xff] }
 0x1cd   : > { %479 = vst.msk [vmem:[#allocation2 + $0x28] sm:$0xff] %vm350_vm3, %v474_v54  ;;  %v544_v56 = vsel %vm350_vm3, %v532_v55, -inf }
 0x1ce   : > { %545 = vmax.xlane.f32.xlu1 %v544_v56 }
 0x1d0   : > { %v449_v57 = vpop.f32.mrf.mxu1 }
 0x1d1   : > { %454 = vst.msk [vmem:[#allocation2 + $0x20] sm:$0xff] %vm350_vm3, %v449_v57 }
 0x1d4   : > { %v476_v58 = vpop.f32.mrf.mxu2  ;;  %v499_v59 = vpop.f32.mrf.mxu3  ;;  %v535_v4 = vld [vmem:[#allocation2 + $0x28] sm:$0xff] }
 0x1d5   : > { %504 = vst.msk [vmem:[#allocation2 + $0x30] sm:$0xff] %vm350_vm3, %v499_v59  ;;  %v553_v5 = vsel %vm350_vm3, %v535_v4, -inf }
 0x1d6   : > { %v524_v60 = vpop.f32.mrf.mxu0 }
 0x1d7   : > { %529 = vst.msk [vmem:[#allocation2 + $0x38] sm:$0xff] %vm350_vm3, %v524_v60 }
 0x1d8   : > { %v451_v61 = vpop.f32.mrf.mxu1  ;;  %v534_v62 = vld [vmem:[#allocation2 + $0x20] sm:$0xff] }
 0x1d9   : > { %v550_v63 = vsel %vm350_vm3, %v534_v62, -inf }
 0x1da   : > { %551 = vmax.xlane.f32.xlu2 %v550_v63 }
 0x1dc   : > { %v501_v0 = vpop.f32.mrf.mxu3  ;;  %v1671_v6 = vld [vmem:[#allocation2 + $0x30] sm:$0xff] }
 0x1dd   : > { %v556_v7 = vsel %vm350_vm3, %v1671_v6, -inf }
 0x1de   : > { %v526_v1 = vpop.f32.mrf.mxu0  ;;  %v537_v2 = vld [vmem:[#allocation2 + $0x38] sm:$0xff] }
 0x1df   : > { %v559_v3 = vsel %vm350_vm3, %v537_v2, -inf }
 0x1e0   : > { %560 = vmax.xlane.f32.xlu0 %v559_v3 }
 0x1e7   : > { %642 = vrot.lane.b32.xlu1 %v1624_v9, %s1465_s9  ;;  %s1477_s9 = smov 20  }
 0x1e8   : > { %554 = vmax.xlane.f32.xlu0 %v553_v5 }
 0x1f2   : > { %719 = vrot.lane.b32.xlu2 %v1624_v9, %s1466_s10  ;;  %s1111_s10 = sshll.u32 %s1533_s25, 6 }
 0x211   : > { %557 = vmax.xlane.f32.xlu1 %v556_v7 }
 0x21b   : > { %v540_v8 = vpop.xlane.xlu2 %539 }
 0x21c   : > { %v562_v10 = vsub.f32 %v530_v43, %v540_v8 }
 0x21e   : > { %v570_v11 = vmul.f32 1.442695, %v562_v10 }
 0x220   : > { %1218 = vpow2.f32 %v570_v11 }
 0x223   : > { %v549_v12 = vpop.xlane.xlu2 %548 }
 0x224   : > { %v565_v13 = vsub.f32 %v533_v46, %v549_v12 }
 0x226   : > { %v1675_v14 = vpop.eup %1218  ;;  %v576_v15 = vmul.f32 1.442695, %v565_v13 }
 0x227   : > { %v586_v16 = vsel %vm350_vm3, %v1675_v14, 0.0 }
 0x228   : > { %1220 = vpow2.f32 %v576_v15  ;;  %587 = vadd.xlane.f32.xlu0 %v586_v16 }
 0x22e   : > { %v1679_v17 = vpop.eup %1220 }
 0x22f   : > { %v595_v18 = vsel %vm350_vm3, %v1679_v17, 0.0 }
 0x230   : > { %596 = vadd.xlane.f32.xlu1 %v595_v18 }
 0x239   : > { %v543_v19 = vpop.xlane.xlu0 %542 }
 0x23a   : > { %v563_v20 = vsub.f32 %v531_v51, %v543_v19 }
 0x23c   : > { %v572_v21 = vmul.f32 1.442695, %v563_v20 }
 0x23e   : > { %1222 = vpow2.f32 %v572_v21 }
 0x241   : > { %v546_v22 = vpop.xlane.xlu1 %545 }
 0x242   : > { %v564_v23 = vsub.f32 %v532_v55, %v546_v22 }
 0x244   : > { %v1683_v24 = vpop.eup %1222  ;;  %v574_v25 = vmul.f32 1.442695, %v564_v23 }
 0x245   : > { %v589_v26 = vsel %vm350_vm3, %v1683_v24, 0.0 }
 0x246   : > { %1224 = vpow2.f32 %v574_v25  ;;  %590 = vadd.xlane.f32.xlu1 %v589_v26 }
 0x24c   : > { %v1687_v27 = vpop.eup %1224 }
 0x24d   : > { %v552_v28 = vpop.xlane.xlu2 %551  ;;  %v592_v29 = vsel %vm350_vm3, %v1687_v27, 0.0 }
 0x24e   : > { %v566_v30 = vsub.f32 %v534_v62, %v552_v28  ;;  %593 = vadd.xlane.f32.xlu2 %v592_v29 }
 0x250   : > { %v578_v31 = vmul.f32 1.442695, %v566_v30 }
 0x252   : > { %1226 = vpow2.f32 %v578_v31 }
 0x253   : > { %v561_v32 = vpop.xlane.xlu0 %560 }
 0x254   : > { %v569_v33 = vsub.f32 %v537_v2, %v561_v32 }
 0x255   : > { %v720_v34 = vpop.permute.xlu2 %719 }
 0x256   : > { %v584_v35 = vmul.f32 1.442695, %v569_v33  ;;  %v725_v36 = vsel %vm647_vm2, %v720_v34, 0 }
 0x257   : > { %734 = vmatpush.bf16.msrb.mxu0 %v725_v36 }
 0x258   : > { %v1692_v37 = vpop.eup %1226  ;;  %1228 = vpow2.f32 %v584_v35 }
 0x259   : > { %v643_v38 = vpop.permute.xlu1 %642  ;;  %v598_v39 = vsel %vm350_vm3, %v1692_v37, 0.0 }
 0x25a   : > { %v649_v40 = vsel %vm647_vm2, %v643_v38, 0  ;;  %599 = vadd.xlane.f32.xlu2 %v598_v39 }
 0x25b   : > { %658 = vmatpush.bf16.msra.mxu1 %v649_v40  ;;  %v555_v41 = vpop.xlane.xlu0 %554 }
 0x25c   : > { %v567_v42 = vsub.f32 %v535_v4, %v555_v41 }
 0x25e   : > { %v1697_v43 = vpop.eup %1228  ;;  %v580_v44 = vmul.f32 1.442695, %v567_v42 }
 0x25f   : > { %v607_v45 = vsel %vm350_vm3, %v1697_v43, 0.0 }
 0x260   : > { %1230 = vpow2.f32 %v580_v44  ;;  %608 = vadd.xlane.f32.xlu0 %v607_v45 }
 0x266   : > { %v1701_v46 = vpop.eup %1230 }
 0x267   : > { %v601_v47 = vsel %vm350_vm3, %v1701_v46, 0.0 }
 0x268   : > { %602 = vadd.xlane.f32.xlu0 %v601_v47 }
 0x272   : > { %746 = vrot.lane.b32.xlu2 %v1624_v9, %s1467_s11 }
 0x27c   : > { %800 = vrot.lane.b32.xlu0 %v1624_v9, %s1468_s14 }
 0x284   : > { %v558_v48 = vpop.xlane.xlu1 %557  ;;  %827 = vrot.lane.b32.xlu0 %v1624_v9, %s1469_s27  ;;  %s924_s27 = scalar_lea.hbm %s1816_s5, %s1111_s10 }
 0x285   : > { %v568_v49 = vsub.f32 %v1671_v6, %v558_v48 }
 0x287   : > { %v582_v50 = vmul.f32 1.442695, %v568_v49  ;;  %v1110_v49 = vld [vmem:[#allocation9 + $0x8] sm:$0xff] }
 0x289   : > { %1232 = vpow2.f32 %v582_v50  ;;  %v1109_v50 = vld [vmem:[#allocation9] sm:$0xff] }
 0x28f   : > { %v1709_v51 = vpop.eup %1232 }
 0x290   : > { %v604_v52 = vsel %vm350_vm3, %v1709_v51, 0.0 }
 0x291   : > { %605 = vadd.xlane.f32.xlu1 %v604_v52 }
 0x29b   : > { %v588_v53 = vpop.xlane.xlu0 %587 }
 0x29c   : > { %1234 = vrcp.f32 %v588_v53 }
 0x2a2   : > { %v1235_v54 = vpop.eup %1234 }
 0x2a3   : > { %v618_v55 = vmul.f32 %v1235_v54, %v1675_v14  ;;  %v597_v56 = vpop.xlane.xlu1 %596 }
 0x2a4   : > { %1236 = vrcp.f32 %v597_v56 }
 0x2a5   : > { %626 = vst.msk [vmem:[%s1715_s29] sm:$0xff] %vm350_vm3, %v618_v55  ;;  %v634_v57 = vpack.c.bf16 %v618_v55, %v618_v55 }
 0x2a7   : > { %1083 = vmatmul.msk.bf16.vlgmr.msra.gmra.mxu1 %vm350_vm3, %v634_v57 }
 0x2aa   : > { %v1237_v58 = vpop.eup %1236  ;;  %773 = vrot.lane.b32.xlu1 %v1624_v9, %s1470_s30  ;;  %s927_s30 = sshll.u32 %s924_s27, 4  ;;  %s928_s30 = int_to_ptr.hbm [resolvable:$true] %s927_s30 }
 0x2ab   : > { %v621_v59 = vmul.f32 %v1237_v58, %v1679_v17 }
 0x2ad   : > { %629 = vst.msk [vmem:[%s1715_s29 + $0x18] sm:$0xff] %vm350_vm3, %v621_v59  ;;  %v637_v60 = vpack.c.bf16 %v621_v59, %v621_v59 }
 0x2af   : > { %1086 = vmatmul.msk.bf16.vlgmr.msrb.gmra.mxu0 %vm350_vm3, %v637_v60 }
 0x2b9   : > { %v591_v61 = vpop.xlane.xlu1 %590 }
 0x2ba   : > { %1238 = vrcp.f32 %v591_v61 }
 0x2c0   : > { %v1239_v62 = vpop.eup %1238 }
 0x2c1   : > { %v619_v63 = vmul.f32 %v1239_v62, %v1683_v24  ;;  %v594_v0 = vpop.xlane.xlu2 %593 }
 0x2c2   : > { %1240 = vrcp.f32 %v594_v0 }
 0x2c3   : > { %627 = vst.msk [vmem:[%s1715_s29 + $0x8] sm:$0xff] %vm350_vm3, %v619_v63  ;;  %v635_v1 = vpack.c.bf16 %v619_v63, %v619_v63 }
 0x2c5   : > { %1084 = vmatmul.msk.bf16.vlgmr.msra.gmra.mxu2 %vm350_vm3, %v635_v1 }
 0x2c8   : > { %v1241_v9 = vpop.eup %1240 }
 0x2c9   : > { %v620_v2 = vmul.f32 %v1241_v9, %v1687_v27 }
 0x2cb   : > { %628 = vst.msk [vmem:[%s1715_s29 + $0x10] sm:$0xff] %vm350_vm3, %v620_v2  ;;  %v636_v3 = vpack.c.bf16 %v620_v2, %v620_v2 }
 0x2cd   : > { %1085 = vmatmul.msk.bf16.vlgmr.msra.gmra.mxu3 %vm350_vm3, %v636_v3  ;;  %v600_v4 = vpop.xlane.xlu2 %599 }
 0x2ce   : > { %1242 = vrcp.f32 %v600_v4 }
 0x2d3   : > { %v609_v5 = vpop.xlane.xlu0 %608 }
 0x2d4   : > { %v1243_v6 = vpop.eup %1242  ;;  %1244 = vrcp.f32 %v609_v5 }
 0x2d5   : > { %v622_v7 = vmul.f32 %v1243_v6, %v1692_v37  ;;  %v747_v8 = vpop.permute.xlu2 %746 }
 0x2d6   : > { %v752_v10 = vsel %vm647_vm2, %v747_v8, 0 }
 0x2d7   : > { %630 = vst.msk [vmem:[%s1715_s29 + $0x20] sm:$0xff] %vm350_vm3, %v622_v7  ;;  %v638_v11 = vpack.c.bf16 %v622_v7, %v622_v7  ;;  %761 = vmatpush.bf16.msrb.mxu1 %v752_v10 }
 0x2da   : > { %v1245_v12 = vpop.eup %1244  ;;  %1087 = vmatmul.msk.bf16.vlgmr.msrb.gmra.mxu1 %vm350_vm3, %v638_v11 }
 0x2db   : > { %v625_v13 = vmul.f32 %v1245_v12, %v1697_v43  ;;  %v603_v14 = vpop.xlane.xlu0 %602  ;;  %885 = vmatpush.bf16.msra.mxu1 %v1110_v49 }
 0x2dc   : > { %1246 = vrcp.f32 %v603_v14 }
 0x2dd   : > { %633 = vst.msk [vmem:[%s1715_s29 + $0x38] sm:$0xff] %vm350_vm3, %v625_v13  ;;  %v641_v21 = vpack.c.bf16 %v625_v13, %v625_v13 }
 0x2df   : > { %886 = vmatpush.bf16.msra.mxu1 %v1109_v50 }
 0x2e2   : > { %v1247_v15 = vpop.eup %1246 }
 0x2e3   : > { %v623_v16 = vmul.f32 %v1247_v15, %v1701_v46 }
 0x2e5   : > { %631 = vst.msk [vmem:[%s1715_s29 + $0x28] sm:$0xff] %vm350_vm3, %v623_v16  ;;  %v639_v28 = vpack.c.bf16 %v623_v16, %v623_v16 }
 0x2ee   : > { %v801_v17 = vpop.permute.xlu0 %800 }
 0x2ef   : > { %v806_v18 = vsel %vm647_vm2, %v801_v17, 0 }
 0x2f0   : > { %815 = vmatpush.bf16.msrb.mxu3 %v806_v18 }
 0x2f6   : > { %v828_v19 = vpop.permute.xlu0 %827 }
 0x2f7   : > { %v833_v20 = vsel %vm647_vm2, %v828_v19, 0 }
 0x2f8   : > { %842 = vmatpush.bf16.msra.mxu0 %v833_v20 }
 0x2fb   : > { %1090 = vmatmul.msk.bf16.vlgmr.msra.gmra.mxu0 %vm350_vm3, %v641_v21 }
 0x304   : > { %v606_v22 = vpop.xlane.xlu1 %605 }
 0x305   : > { %1248 = vrcp.f32 %v606_v22 }
 0x30b   : > { %v1249_v23 = vpop.eup %1248 }
 0x30c   : > { %v624_v24 = vmul.f32 %v1249_v23, %v1709_v51 }
 0x30e   : > { %632 = vst.msk [vmem:[%s1715_s29 + $0x30] sm:$0xff] %vm350_vm3, %v624_v24  ;;  %v640_v25 = vpack.c.bf16 %v624_v24, %v624_v24 }
 0x310   : > { %1089 = vmatmul.msk.bf16.vlgmr.msrb.gmra.mxu3 %vm350_vm3, %v640_v25 }
 0x31c   : > { %v774_v26 = vpop.permute.xlu1 %773 }
 0x31d   : > { %v779_v27 = vsel %vm647_vm2, %v774_v26, 0 }
 0x31e   : > { %788 = vmatpush.bf16.msrb.mxu2 %v779_v27 }
 0x321   : > { %1088 = vmatmul.msk.bf16.vlgmr.msrb.gmra.mxu2 %vm350_vm3, %v639_v28 }
 0x324   : > { %v660_v29 = vpop.f32.mrf.mxu1 }
 0x325   : > { %664 = vst.msk [vmem:[#allocation3] sm:$0xff] %vm330_vm1, %v660_v29 }
 0x32c   : > { %v662_v30 = vpop.f32.mrf.mxu1  ;;  %v736_v31 = vpop.f32.mrf.mxu0 }
 0x32d   : > { %741 = vrot.lane.b32.xlu0 %v736_v31, %s1471_s16  ;;  %s899_s16 = scalar_lea.sflag [#allocation12], %s1609_s22 }
 0x334   : > { %v738_v32 = vpop.f32.mrf.mxu0 }
 0x348   : > { %v682_v33 = vpop.f32.mrf.mxu2 }
 0x349   : > { %687 = vrot.lane.b32.xlu1 %v682_v33, %s1472_s7  ;;  %s1354_s7 = sshra.s32 %s928_s30, 4  ;;  %s1355_s7 = int_to_ptr.hbm [resolvable:$true] %s1354_s7 }
 0x34a   : > { %p1361_p12 = scmp.lt.s32.totalorder %s1355_s7, %s1816_s5 }
 0x350   : > { %v684_v34 = vpop.f32.mrf.mxu2  ;;  %v709_v35 = vpop.f32.mrf.mxu3 }
 0x351   : > { %714 = vrot.lane.b32.xlu2 %v709_v35, %s1818_s13 }
 0x357   : > { %v763_v36 = vpop.f32.mrf.mxu1 }
 0x358   : > { %v711_v37 = vpop.f32.mrf.mxu3  ;;  %768 = vrot.lane.b32.xlu1 %v763_v36, %s1474_s26  ;;  %s1356_s26 = scalar_lea.hbm %s1355_s7, 64 }
 0x359   : > { %p1357_p1 = scmp.ne.s32.totalorder %s1355_s7, %s1356_s26 }
 0x35b   : > { %p1358_p3 = pnand %p1357_p1, %p1578_p4 }
 0x35d   : > { %p1359_p5 = pneg %p1358_p3 }
 0x35f   : > { %v765_v38 = vpop.f32.mrf.mxu1 }
 0x378   : > { %v844_v39 = vpop.f32.mrf.mxu0 }
 0x379   : > { %849 = vrot.lane.b32.xlu1 %v844_v39, %s1475_s17 }
 0x380   : > { %v846_v40 = vpop.f32.mrf.mxu0 }
 0x393   : > { %v817_v41 = vpop.f32.mrf.mxu3 }
 0x394   : > { %822 = vrot.lane.b32.xlu0 %v817_v41, %s1476_s8 }
 0x39b   : > { %v819_v42 = vpop.f32.mrf.mxu3 }
 0x39f   : > { %v742_v47 = vpop.permute.xlu0 %741 }
 0x3a4   : > { %v790_v43 = vpop.f32.mrf.mxu2 }
 0x3a5   : > { %795 = vrot.lane.b32.xlu2 %v790_v43, %s1477_s9  ;;  %s1360_s9 = scalar_lea.hbm %s1816_s5, 128 }
 0x3a6   : > { %p1362_p7 = scmp.lt.s32.totalorder %s1360_s9, %s1356_s26 }
 0x3a8   : > { %p1363_p8 = por %p1362_p7, %p1361_p12 }
 0x3aa   : > { %p1364_p9 = pnand %p1363_p8, %p1359_p5 }
 0x3ab   : > { %v715_v46 = vpop.permute.xlu2 %714 }
 0x3ac   : > { %v792_v44 = vpop.f32.mrf.mxu2 }
 0x3bb   : > { %v688_v45 = vpop.permute.xlu1 %687 }
 0x3bc   : > { %691 = vst.msk [vmem:[#allocation3] sm:$0xff] %vm690_vm4, %v688_v45 }
 0x3bd   : > { %718 = vst.msk [vmem:[#allocation3] sm:$0xff] %vm717_vm5, %v715_v46 }
 0x3be   : > { %745 = vst.msk [vmem:[#allocation3] sm:$0xff] %vm744_vm6, %v742_v47 }
 0x3ca   : > { %v769_v48 = vpop.permute.xlu1 %768 }
 0x3cb   : > { %772 = vst.msk [vmem:[#allocation3] sm:$0xff] %vm771_vm7, %v769_v48 }
 0x3eb   : > { %v850_v53 = vpop.permute.xlu1 %849 }
 0x3ff   : > { %v796_v51 = vpop.permute.xlu2 %795 }
 0x400   : > { %799 = vst.msk [vmem:[#allocation3] sm:$0xff] %vm798_vm8, %v796_v51 }
 0x406   : > { %v823_v52 = vpop.permute.xlu0 %822 }
 0x407   : > { %826 = vst.msk [vmem:[#allocation3] sm:$0xff] %vm825_vm9, %v823_v52 }
 0x408   : > { %853 = vst.msk [vmem:[#allocation3] sm:$0xff] %vm852_vm10, %v850_v53 }
 0x40f   : > { %v854_v54 = vld [vmem:[#allocation3] sm:$0xff] }
 0x410   : > { %v855_v55 = vpack.c.bf16 %v854_v54, %v854_v54 }
 0x412   : > { %1099 = vmatmul.msk.bf16.vlgmr.msra.gmra.mxu1 %vm305_vm0, %v855_v55 }
 0x413   : > { %1367 = shalt.err (!%p1364_p9)
}
 0x414   : > { %s1478_s29 = smov 128   ;;  %s1825_s10 = smov 8   ;;  %v1217_v56 = vld [vmem:[%s1814_s3] ss:$0 sm:$0xff] }
 0x415   : > { %1123 = dma.vmem_to_hbm [thread:$0]  (%p1578_p4), %s926_s28, 1024, %s928_s30, %s899_s16, %s1478_s29, %s1478_s29, %s1825_s10  }
 0x416   : > { %s1102_s11 = sshll.u32 %s1533_s25, 3  ;;  %s1826_s7 = sshll.u32 %s1609_s22, 3 }
 0x417   : > { %s909_s17 = scalar_lea.hbm %s1815_s4, %s1102_s11  ;;  %s278_s26 = scalar_lea.vmem [#allocation10], %s1826_s7 }
 0x418   : > { %s911_s8 = sshll.u32 %s278_s26, 4  ;;  %s913_s9 = sshll.u32 %s909_s17, 4  ;;  %s912_s8 = int_to_ptr.vmem [resolvable:$true] %s911_s8  ;;  %s914_s9 = int_to_ptr.hbm [resolvable:$true] %s913_s9 }
 0x419   : > { %s894_s28 = scalar_lea.sflag [#allocation6], %s1609_s22  ;;  %s1382_s25 = sshra.s32 %s914_s9, 4  ;;  %s1383_s25 = int_to_ptr.hbm [resolvable:$true] %s1382_s25 }
 0x41a   : > { %s1384_s30 = scalar_lea.hbm %s1383_s25, 8  ;;  %s1388_s10 = scalar_lea.hbm %s1815_s4, 16 }
 0x41b   : > { %p1385_p10 = scmp.ne.s32.totalorder %s1383_s25, %s1384_s30  ;;  %p1389_p0 = scmp.lt.s32.totalorder %s1383_s25, %s1815_s4 }
 0x41c   : > { %p1390_p2 = scmp.lt.s32.totalorder %s1388_s10, %s1384_s30 }
 0x41d   : > { %p1386_p13 = pnand %p1385_p10, %p1578_p4 }
 0x41e   : > { %p1391_p1 = por %p1390_p2, %p1389_p0 }
 0x41f   : > { %p1387_p11 = pneg %p1386_p13 }
 0x421   : > { %p1392_p3 = pnand %p1391_p1, %p1387_p11 }
 0x48f   : > { %v888_v57 = vpop.f32.mrf.mxu1 }
 0x490   : > { %v889_v58 = vadd.f32 %v1217_v56, %v888_v57 }
 0x492   : > { %892 = vst [vmem:[%s278_s26] sm:$0xff] %v889_v58 }
 0x493   : > { %1395 = shalt.err (!%p1392_p3)
}
 0x494   : > { %1122 = dma.vmem_to_hbm [thread:$0]  (%p1578_p4), %s912_s8, 128, %s914_s9, %s894_s28  }
 0x497   : > { %v890_v59 = vpop.f32.mrf.mxu1 }
 0x498 PF: > { %s942_s22 = sand.u32 1, %s1430_s18   ;;  %p1827_p5 = scmp.ge.s32.totalorder %s1442_s21, 2 }
 0x499   : > { %s943_s27 = scalar_lea.sflag [#allocation6], %s942_s22 }
 0x49a   : > { %p1138_p12 = pnand %p1827_p5, %p1582_p6 }
 0x49c   : > { %p1139_p7 = pneg %p1138_p12 }
 0x49e   : > { %1421 = dma.done.wait (%p1139_p7), %s943_s27, 128  }
 0x49f   : > { %1423 = vsyncadd (%p1139_p7), %s943_s27, 4294967168  ;;  %s953_s17 = scalar_lea.sflag [#allocation12], %s942_s22 }
 0x4a0   : > { %1425 = dma.done.wait (%p1139_p7), %s953_s17, 1024  }
 0x4a1   : > { %1427 = vsyncadd (%p1139_p7), %s953_s17, 4294966272  ;;  %p23_p4 = scmp.ge.s32.totalorder %s1552_s12, 4   ;;  %s1828_s18 = smov %s1434_s19 }
 0x4a2   : > { %s1829_s19 = smov %s1438_s20  ;;  %s1830_s20 = smov %s1563_s15 }
 0x4a3   : > { %s1831_s21 = smov %s1552_s12  ;;  %25 = sbr.rel (!%p23_p4) target bundleno = 8 (0x8), region = 113 }
 0x4a8   :  { %959 = vsyncpa [#allocation5], 1 }
 0x4a9   :  { %961 = vsyncpa [#allocation5 + $0x1], 1 }
 0x4aa   :  { %962 = vsyncpa [#allocation8], 1 }
 0x4ab   :  { %963 = vsyncpa [#allocation6], 1 }
 0x4ac   :  { %965 = vsyncpa [#allocation6 + $0x1], 1 }
 0x4ad   :  { %966 = vsyncpa [#allocation12], 1 }
 0x4ae   :  { %968 = vsyncpa [#allocation12 + $0x1], 1 }

</bundles_post_ra>
